<compile_context>
chip_gen: v6e
topology: v6e:2x2x1
jax: 0.10.0
libtpu: 0.0.40
codegen_flags: <defaults>
</compile_context>

<pallas_src>
import jax
import jax.numpy as jnp
from jax.experimental import pallas as pl
from jax.experimental.pallas import tpu as pltpu


def _stable_factor_kernel(alpha_row_ref, alpha_col_ref, a_ref, o_ref):
    # alpha_row_ref: (tm, 1)   row scale for this slab
    # alpha_col_ref: (1, N)    column scale (resident across grid steps)
    # a_ref / o_ref: (tm, N)   lane-dense row slab
    o_ref[...] = a_ref[...] * alpha_row_ref[...] * alpha_col_ref[...]


def _vmem_capacity_bytes():
    try:
        return int(pltpu.get_tpu_info().vmem_capacity_bytes)
    except Exception:
        # Conservative default: v7x per-TensorCore VMEM.
        return 64 * 1024 * 1024


def _choose_block_rows(N, itemsize, vmem_cap):
    """Pick row-slab height so the pipelined working set fits VMEM.

    Working set = (A slab + out slab), each double-buffered = 4 slabs of
    tm * N * itemsize bytes.  Budget ~45% of physical VMEM, leaving headroom
    for the alpha vectors and compiler scratch.
    """
    budget = int(vmem_cap * 0.45)
    tm = budget // max(1, 4 * N * itemsize)
    tm = min(tm, 1024, N)
    if tm < N:
        tm = max(8, (tm // 8) * 8)          # sublane-aligned partial blocks
    else:
        tm = N                               # full-dim block always legal
        if N >= 256:
            # Prefer >= 2 row blocks so the "parallel" grid axis can shard
            # across both TensorCores on multi-TC chips (v7x).
            half = (((N + 1) // 2) + 7) // 8 * 8
            if half < N:
                tm = half
    return tm


def stable_factor_forward(A_hat, alpha_source, alpha_target, net="s",
                          block_rows=None, donate_a=False):
    """Pallas equivalent of StableFactor.forward.

    A_hat: [N, N] normalized Laplacian (float32 by default; bf16 also works
           and halves HBM traffic if the consumer tolerates it).
    alpha_source / alpha_target: [N_s] / [N_t] stability factors.
    net: 's' selects alpha_source, anything else selects alpha_target.
    block_rows: optional override of the row-slab height.
    donate_a: alias A_hat's buffer to the output (capacity win only).
    """
    alpha = alpha_source if net == "s" else alpha_target
    N = A_hat.shape[0]
    if A_hat.shape != (N, N):
        raise ValueError(f"A_hat must be square, got shape {A_hat.shape}")
    if alpha.shape != (N,):
        raise ValueError(
            f"alpha for net={net!r} has shape {alpha.shape}, but A_hat has "
            f"{N} rows; the selected graph's alpha must match A_hat's size")

    dtype = A_hat.dtype
    itemsize = jnp.dtype(dtype).itemsize
    vmem_cap = _vmem_capacity_bytes()

    if block_rows is None:
        tm = _choose_block_rows(N, itemsize, vmem_cap)
    else:
        tm = min(int(block_rows), N)
        if tm < N:
            tm = max(8, (tm // 8) * 8)

    num_blocks = pl.cdiv(N, tm)

    alpha_row = alpha.reshape(N, 1).astype(dtype)   # scales rows
    alpha_col = alpha.reshape(1, N).astype(dtype)   # scales columns

    # Raise the scoped-VMEM limit to cover the double-buffered slabs.
    slab_bytes = tm * N * itemsize
    needed = 4 * slab_bytes + 4 * N * itemsize + (2 << 20)
    vmem_limit = max(needed, 16 << 20)
    vmem_limit = min(vmem_limit, int(vmem_cap * 0.9))

    cost = pl.CostEstimate(
        flops=2 * N * N,
        transcendentals=0,
        bytes_accessed=2 * N * N * itemsize + 2 * N * itemsize,
    )

    extra = {}
    if donate_a:
        extra["input_output_aliases"] = {2: 0}   # A_hat is operand index 2

    return pl.pallas_call(
        _stable_factor_kernel,
        out_shape=jax.ShapeDtypeStruct((N, N), dtype),
        grid_spec=pltpu.PrefetchScalarGridSpec(
            num_scalar_prefetch=0,
            grid=(num_blocks,),
            in_specs=[
                pl.BlockSpec((tm, 1), lambda i: (i, 0)),   # row scale
                pl.BlockSpec((1, N), lambda i: (0, 0)),    # col scale (resident)
                pl.BlockSpec((tm, N), lambda i: (i, 0)),   # A_hat row slab
            ],
            out_specs=pl.BlockSpec((tm, N), lambda i: (i, 0)),
        ),
        compiler_params=pltpu.CompilerParams(
            dimension_semantics=("parallel",),
            vmem_limit_bytes=int(vmem_limit)),
        cost_estimate=cost,
        **extra,
    )(alpha_row, alpha_col, A_hat)


def _reference(A_hat, alpha):
    # Literal PyTorch formula: (alpha_col * (A * alpha_col).T).T
    alpha_col = alpha.reshape(-1, 1)
    return (alpha_col * (A_hat * alpha_col).T).T


if __name__ == "__main__":
    key = jax.random.PRNGKey(0)

    # --- Case 1: small aligned graph (N = 256) ---------------------------
    N = 256
    # StableFactor.__init__ initializes alpha to ones; perturb the source
    # alpha deterministically so the kernel does real work.
    alpha_source = jnp.ones((N,), dtype=jnp.float32) + 0.1 * jax.random.normal(
        jax.random.fold_in(key, 1), (N,), dtype=jnp.float32)
    alpha_target = jnp.ones((N,), dtype=jnp.float32)
    A_hat = jax.random.uniform(key, (N, N), dtype=jnp.float32)

    out = jax.block_until_ready(
        stable_factor_forward(A_hat, alpha_source, alpha_target, net="s"))
    ref = _reference(A_hat, alpha_source)
    assert out.shape == (N, N)
    assert jnp.allclose(out, ref, rtol=1e-6, atol=1e-6)

    # --- Case 2: ragged N (not a multiple of the tile), forced row split --
    N2 = 200
    alpha2 = jnp.ones((N2,), dtype=jnp.float32) + 0.05 * jax.random.normal(
        jax.random.fold_in(key, 2), (N2,), dtype=jnp.float32)
    A2 = jax.random.uniform(jax.random.fold_in(key, 3), (N2, N2),
                            dtype=jnp.float32)
    out2 = jax.block_until_ready(
        stable_factor_forward(A2, alpha_source, alpha2, net="t",
                              block_rows=64))
    ref2 = _reference(A2, alpha2)
    assert out2.shape == (N2, N2)
    assert jnp.allclose(out2, ref2, rtol=1e-6, atol=1e-6)

    print("KERNEL_OK")
</pallas_src>

<mosaic_0001>
module attributes {stable_mosaic.version = 11 : i64} {
  func.func @_stable_factor_kernel(%arg0: i32, %arg1: memref<128x1xf32, #tpu.memory_space<vmem>>, %arg2: memref<1x256xf32, #tpu.memory_space<vmem>>, %arg3: memref<128x256xf32, #tpu.memory_space<vmem>>, %arg4: memref<128x256xf32, #tpu.memory_space<vmem>>) attributes {dimension_semantics = [#tpu.dimension_semantics<parallel>], iteration_bounds = array<i64: 2>, scalar_prefetch = 0 : i64, scratch_operands = 0 : i64, tpu.core_type = #tpu.core_type<tc>, window_params = [{transform_indices = @transform_0, window_bounds = array<i64: 128, 1>}, {pipeline_mode = #tpu.pipeline_mode<synchronous>, transform_indices = @transform_1, window_bounds = array<i64: 1, 256>}, {transform_indices = @transform_2, window_bounds = array<i64: 128, 256>}, {transform_indices = @transform_3, window_bounds = array<i64: 128, 256>}]} {
    %c0 = arith.constant 0 : index
    %c0_0 = arith.constant 0 : index
    %0 = vector.load %arg3[%c0, %c0_0] : memref<128x256xf32, #tpu.memory_space<vmem>>, vector<128x256xf32>
    %c0_1 = arith.constant 0 : index
    %c0_2 = arith.constant 0 : index
    %1 = vector.load %arg1[%c0_1, %c0_2] : memref<128x1xf32, #tpu.memory_space<vmem>>, vector<128x1xf32>
    %2 = vector.broadcast %1 : vector<128x1xf32> to vector<128x256xf32>
    %3 = arith.mulf %0, %2 : vector<128x256xf32>
    %c0_3 = arith.constant 0 : index
    %c0_4 = arith.constant 0 : index
    %4 = vector.load %arg2[%c0_3, %c0_4] : memref<1x256xf32, #tpu.memory_space<vmem>>, vector<1x256xf32>
    %5 = vector.broadcast %4 : vector<1x256xf32> to vector<128x256xf32>
    %6 = arith.mulf %3, %5 : vector<128x256xf32>
    %c0_5 = arith.constant 0 : index
    %c0_6 = arith.constant 0 : index
    %7 = vector.load %arg4[%c0_5, %c0_6] : memref<128x256xf32, #tpu.memory_space<vmem>>, vector<128x256xf32>
    tpu.vector_store %arg4[%c0_5, %c0_6], %6 {strides = array<i32>} : memref<128x256xf32, #tpu.memory_space<vmem>>, vector<128x256xf32>,
    return
  }
  func.func @transform_0(%arg0: i32) -> (i32, i32) {
    %c0_i32 = arith.constant 0 : i32
    %c0_i32_0 = arith.constant 0 : i32
    return %arg0, %c0_i32 : i32, i32
  }
  func.func @transform_1(%arg0: i32) -> (i32, i32) {
    %c0_i32 = arith.constant 0 : i32
    %c0_i32_0 = arith.constant 0 : i32
    %c0_i32_1 = arith.constant 0 : i32
    return %c0_i32, %c0_i32_0 : i32, i32
  }
  func.func @transform_2(%arg0: i32) -> (i32, i32) {
    %c0_i32 = arith.constant 0 : i32
    %c0_i32_0 = arith.constant 0 : i32
    return %arg0, %c0_i32 : i32, i32
  }
  func.func @transform_3(%arg0: i32) -> (i32, i32) {
    %c0_i32 = arith.constant 0 : i32
    %c0_i32_0 = arith.constant 0 : i32
    return %arg0, %c0_i32 : i32, i32
  }
}

</mosaic_0001>

<bundles_post_ra>
// kernel: tpu_custom_call.1
= control target key start
LH: loop header
LB: loop body
LE: loop exit
PB: predicated region body
PF: predicated region fallthrough
CT: control target
= control target key end

     0   :  { %8 = vsyncpa [#allocation3], 0  ;;  %s1016_s0 = inlined_call_operand.vmem [shape: f32[256,1], index: 0, kind: input, shape index: {}]   ;;  %s1017_s1 = inlined_call_operand.vmem [shape: f32[1,256], index: 1, kind: input, shape index: {}]   ;;  %s1018_s2 = inlined_call_operand.hbm [shape: f32[256,256], index: 2, kind: input, shape index: {}]   ;;  %s1019_s3 = inlined_call_operand.hbm [shape: f32[256,256], index: 3, kind: output, shape index: {}]  }
   0x1   :  { %10 = vsyncpa [#allocation3 + $0x1], 0 }
   0x2   :  { %11 = vsyncpa [#allocation4], 0 }
   0x3   :  { %13 = vsyncpa [#allocation4 + $0x1], 0  ;;  %s746_s12 = smov 0   ;;  %s748_s13 = smov 0  }
   0x4   :  { %s750_s14 = smov 0   ;;  %s752_s15 = smov 0  }
   0x5 LB: > { %s767_s16 = sadd.s32 4294967295, %s717_s15   ;;  %s550_s17 = sadd.s32 4294967294, %s717_s15   ;;  %s717_s15 = sphi %s752_s15, %s1034_s15   ;;  %s713_s14 = sphi %s750_s14, %s1033_s14   ;;  %s709_s13 = sphi %s748_s13, %s1032_s13   ;;  %s705_s12 = sphi %s746_s12, %s1031_s12  }
   0x6   : > { %s771_s18 = sadd.s32 1, %s717_s15   ;;  %s73_s19 = sadd.s32 1, %s713_s14 }
   0x7   : > { %s70_s20 = ssub.s32 %s717_s15, %s771_s18  ;;  %p80_p0 = scmp.ne.s32.totalorder %s713_s14, %s709_s13 }
   0x8   : > { %p71_p1 = scmp.eq.s32.totalorder %s70_s20, 0  ;;  %p81_p2 = scmp.eq.s32.totalorder %s717_s15, 0 }
   0x9   : > { %p86_p3 = scmp.ne.s32.totalorder %s709_s13, %s705_s12  ;;  %p87_p4 = scmp.eq.s32.totalorder %s767_s16, 0 }
   0xa   : > { %s783_s21 = scalar_select %p71_p1, %s713_s14, %s73_s19  }
   0xb   : > { %p785_p5 = por %p81_p2, %p80_p0  ;;  %p789_p6 = por %p87_p4, %p86_p3 }
   0xc   : > { %p110_p7 = scmp.eq.s32.totalorder %s767_s16, 1  ;;  %p116_p8 = scmp.eq.s32.totalorder %s550_s17, 1 }
   0xd   : > { %s1023_s23 = scalar_select %p789_p6, 1, 0 }
   0xe   : > { %p584_p10 = scmp.lt.s32.totalorder %s717_s15, 2  ;;  %p796_p11 = por %p110_p7, %p80_p0 }
   0xf   : > { %p800_p12 = por %p116_p8, %p86_p3  ;;  %s148_s26 = sand.u32 1, %s713_s14  }
  0x10   : > { %s1024_s24 = scalar_select %p796_p11, 1, 0 }
  0x11   : > { %s1025_s25 = scalar_select %p800_p12, 1, 0 }
  0x12   : > { %s569_s27 = sshll.u32 %s717_s15, 12  ;;  %s553_s28 = sshll.u32 %s148_s26, 8 }
  0x13   : > { %s809_s4 = scalar_lea.hbm %s1018_s2, %s569_s27  ;;  %s152_s5 = scalar_lea.vmem [#allocation2], %s553_s28 }
  0x14   : > { %s160_s6 = sshll.u32 %s152_s5, 4  ;;  %p813_p13 = pnand %p584_p10, %p785_p5  ;;  %s817_s6 = int_to_ptr.vmem [resolvable:$true] %s160_s6 }
  0x15   : > { %s819_s8 = scalar_lea.sflag [#allocation3], %s148_s26  ;;  %s625_s9 = scalar_lea.hbm %s809_s4, 4096 }
  0x16   : > { %p626_p0 = scmp.ne.s32.totalorder %s809_s4, %s625_s9  ;;  %p627_p1 = pneg %p813_p13 }
  0x17   : > { %s630_s17 = scalar_lea.hbm %s1018_s2, 8192  ;;  %p631_p4 = scmp.lt.s32.totalorder %s809_s4, %s1018_s2 }
  0x18   : > { %p628_p2 = pnand %p627_p1, %p626_p0  ;;  %p632_p5 = scmp.lt.s32.totalorder %s630_s17, %s625_s9 }
  0x1a   : > { %p629_p3 = pneg %p628_p2  ;;  %p633_p7 = por %p632_p5, %p631_p4 }
  0x1c   : > { %p634_p8 = pnand %p633_p7, %p629_p3 }
  0x1e   : > { %637 = shalt.err (!%p634_p8)
}
  0x1f   : > { %s638_s22 = scalar_lea.vmem %s817_s6, 4096  ;;  %s719_s26 = smov [#allocation2]  }
  0x20   : > { %p639_p10 = scmp.ne.s32.totalorder %s817_s6, %s638_s22  ;;  %s643_s27 = sshll.u32 %s719_s26, 4  ;;  %s644_s27 = int_to_ptr.vmem [resolvable:$false] %s643_s27 }
  0x21   : > { %s645_s28 = scalar_lea.vmem %s644_s27, 8192  ;;  %p646_p2 = scmp.lt.s32.totalorder %s817_s6, %s644_s27 }
  0x22   : > { %p641_p9 = pnand %p639_p10, %p627_p1  ;;  %p647_p12 = scmp.lt.s32.totalorder %s645_s28, %s638_s22 }
  0x24   : > { %p642_p0 = pneg %p641_p9  ;;  %p648_p11 = por %p647_p12, %p646_p2 }
  0x26   : > { %p649_p6 = pnand %p648_p11, %p642_p0 }
  0x28   : > { %652 = shalt.err (!%p649_p6)
}
  0x29   : > { %s720_s29 = smov 256   ;;  %s721_s30 = smov 16  }
  0x2a   : > { %579 = dma.hbm_to_vmem [thread:$0]  (!%p813_p13), %s809_s4, 4096, %s817_s6, %s819_s8, %s720_s29, %s720_s29, %s721_s30  }
  0x2b   : > { %p557_p9 = scmp.ge.s32.totalorder %s717_s15, 1  ;;  %p168_p1 = scmp.lt.s32.totalorder %s717_s15, 3 }
  0x2d   : > { %p169_p3 = pnand %p557_p9, %p168_p1 }
  0x2e   : > { %s843_s5 = sand.u32 (!%p169_p3), 1, %s709_s13   ;;  %p1027_p6 = scmp.ne.s32.totalorder (!%p169_p3), %s1023_s23, 0 }
  0x2f   : > { %172 = sbr.rel (%p169_p3) target bundleno = 231 (0xe7), region = 32  ;;  %s558_s9 = sshll.u32 (!%p169_p3), %s843_s5, 8 }
  0x30   : > { %s175_s10 = scalar_lea.sflag (!%p169_p3), [#allocation3], %s843_s5  ;;  %s849_s11 = scalar_lea.vmem (!%p169_p3), [#allocation2], %s558_s9 }
  0x34   : > { %696 = dma.done.wait (%p1027_p6), %s175_s10, 4096  }
  0x35   : > { %698 = vsyncadd (%p1027_p6), %s175_s10, 4294963200  ;;  %s560_s4 = sshll.u32 %s767_s16, 4  ;;  %v722_v0 = vmov 0   ;;  %v376_v17 = vlaneseq  ;;  %v374_v21 = vld [vmem:[%s1017_s1] sm:$0x3]  ;;  %v219_v23 = vld [vmem:[%s849_s11 + $0x28] sm:$0xff] }
  0x36   : > { %624 = vset.pattern.permute.xlu1 %v722_v0  ;;  %623 = vset.pattern.permute.xlu0 %v722_v0  ;;  %p207_p11 = scmp.lt.s32.totalorder %s560_s4, 31  ;;  %v218_v22 = vld [vmem:[%s849_s11 + $0x20] sm:$0xff]  ;;  %v215_v25 = vld [vmem:[%s849_s11 + $0x8] sm:$0xff]  ;;  %v220_v34 = vld [vmem:[%s849_s11 + $0x30] sm:$0xff]  ;;  %s880_s20 = scalar_lea.vmem [#allocation5], %s558_s9 }
  0x37   : > { %v377_v18 = vshrl.u32 %v376_v17, 7  ;;  %v214_v24 = vld [vmem:[%s849_s11] sm:$0xff]  ;;  %v221_v35 = vld [vmem:[%s849_s11 + $0x38] sm:$0xff]  ;;  %v216_v36 = vld [vmem:[%s849_s11 + $0x10] sm:$0xff]  ;;  %s571_s22 = sshll.u32 %s767_s16, 12  ;;  %s465_s26 = sshll.u32 %s880_s20, 4  ;;  %s965_s26 = int_to_ptr.vmem [resolvable:$true] %s465_s26 }
  0x38   : > { %s1036_s4 = smov (!%p207_p11, %s560_s4), 31  ;;  %v217_v37 = vld [vmem:[%s849_s11 + $0x18] sm:$0xff]  ;;  %v224_v48 = vld [vmem:[%s849_s11 + $0x50] sm:$0xff]  ;;  %v222_v50 = vld [vmem:[%s849_s11 + $0x40] sm:$0xff]  ;;  %s963_s16 = scalar_lea.hbm %s1019_s3, %s571_s22 }
  0x39   : > { %s561_s6 = sshll.u32 %s1036_s4, 3  ;;  %v378_v19 = vsub.s32 0, %v377_v18  ;;  %v382_v20 = vsub.s32 1, %v377_v18  ;;  %v225_v49 = vld [vmem:[%s849_s11 + $0x58] sm:$0xff]  ;;  %v223_v51 = vld [vmem:[%s849_s11 + $0x48] sm:$0xff]  ;;  %v228_v62 = vld [vmem:[%s849_s11 + $0x70] sm:$0xff] }
  0x3a   : > { %s210_s17 = scalar_lea.vmem %s1016_s0, %s561_s6  ;;  %v229_v63 = vld [vmem:[%s849_s11 + $0x78] sm:$0xff]  ;;  %v226_v0 = vld [vmem:[%s849_s11 + $0x60] sm:$0xff]  ;;  %s451_s29 = scalar_lea.sflag [#allocation4], %s843_s5 }
  0x3b   : > { %v248_v1 = vld [vmem:[%s210_s17 + $0x10] sm:$0xff]  ;;  %v246_v2 = vld [vmem:[%s210_s17] sm:$0xff]  ;;  %v249_v3 = vld [vmem:[%s210_s17 + $0x18] sm:$0xff]  ;;  %v866_v26 = vrot.slane %v374_v21, %v378_v19  ;;  %v868_v27 = vrot.slane %v374_v21, %v382_v20  ;;  %s653_s30 = scalar_lea.vmem %s965_s26, 4096  ;;  %p1028_p13 = scmp.ne.s32.totalorder %s1024_s24, 0 }
  0x3c   : > { %274 = vperm.xlu1 %624, %v248_v1   ;;  %264 = vperm.xlu0 %623, %v246_v2   ;;  %v247_v4 = vld [vmem:[%s210_s17 + $0x8] sm:$0xff]  ;;  %v250_v6 = vld [vmem:[%s210_s17 + $0x20] sm:$0xff]  ;;  %v253_v7 = vld [vmem:[%s210_s17 + $0x38] sm:$0xff]  ;;  %p654_p12 = scmp.ne.s32.totalorder %s965_s26, %s653_s30  ;;  %s723_s9 = smov [#allocation5]  }
  0x3d   : > { %v251_v5 = vld [vmem:[%s210_s17 + $0x28] sm:$0xff]  ;;  %v252_v8 = vld [vmem:[%s210_s17 + $0x30] sm:$0xff]  ;;  %v254_v10 = vld [vmem:[%s210_s17 + $0x40] sm:$0xff]  ;;  %s657_s10 = sshll.u32 %s723_s9, 4  ;;  %s658_s10 = int_to_ptr.vmem [resolvable:$false] %s657_s10 }
  0x3e   : > { %v255_v9 = vld [vmem:[%s210_s17 + $0x48] sm:$0xff]  ;;  %v257_v11 = vld [vmem:[%s210_s17 + $0x58] sm:$0xff]  ;;  %v256_v12 = vld [vmem:[%s210_s17 + $0x50] sm:$0xff]  ;;  %p655_p4 = pnand %p654_p12, %p1028_p13  ;;  %p660_p7 = scmp.lt.s32.totalorder %s965_s26, %s658_s10 }
  0x3f   : > { %v259_v13 = vld [vmem:[%s210_s17 + $0x68] sm:$0xff]  ;;  %v258_v14 = vld [vmem:[%s210_s17 + $0x60] sm:$0xff]  ;;  %v261_v15 = vld [vmem:[%s210_s17 + $0x78] sm:$0xff] }
  0x40   : > { %279 = vperm.xlu1 %624, %v249_v3   ;;  %269 = vperm.xlu0 %623, %v247_v4   ;;  %v260_v16 = vld [vmem:[%s210_s17 + $0x70] sm:$0xff]  ;;  %v227_v1 = vld [vmem:[%s849_s11 + $0x68] sm:$0xff]  ;;  %p656_p5 = pneg %p655_p4 }
  0x44   : > { %289 = vperm.xlu1 %624, %v251_v5   ;;  %284 = vperm.xlu0 %623, %v250_v6  }
  0x48   : > { %299 = vperm.xlu1 %624, %v253_v7   ;;  %294 = vperm.xlu0 %623, %v252_v8  }
  0x4c   : > { %309 = vperm.xlu1 %624, %v255_v9   ;;  %304 = vperm.xlu0 %623, %v254_v10  }
  0x50   : > { %319 = vperm.xlu1 %624, %v257_v11   ;;  %314 = vperm.xlu0 %623, %v256_v12   ;;  %v232_v12 = vld [vmem:[%s849_s11 + $0x90] sm:$0xff] }
  0x54   : > { %329 = vperm.xlu1 %624, %v259_v13   ;;  %324 = vperm.xlu0 %623, %v258_v14   ;;  %v233_v13 = vld [vmem:[%s849_s11 + $0x98] sm:$0xff]  ;;  %v230_v14 = vld [vmem:[%s849_s11 + $0x80] sm:$0xff] }
  0x58   : > { %339 = vperm.xlu1 %624, %v261_v15   ;;  %334 = vperm.xlu0 %623, %v260_v16   ;;  %v231_v15 = vld [vmem:[%s849_s11 + $0x88] sm:$0xff] }
  0xb7   : > { %v275_v28 = vpop.permute.xlu1 %274  ;;  %v265_v29 = vpop.permute.xlu0 %264 }
  0xb8   : > { %v346_v30 = vmul.f32 %v275_v28, %v218_v22  ;;  %v347_v31 = vmul.f32 %v275_v28, %v219_v23  ;;  %v342_v32 = vmul.f32 %v265_v29, %v214_v24  ;;  %v343_v33 = vmul.f32 %v265_v29, %v215_v25  ;;  %v236_v28 = vld [vmem:[%s849_s11 + $0xb0] sm:$0xff]  ;;  %v237_v29 = vld [vmem:[%s849_s11 + $0xb8] sm:$0xff] }
  0xba   : > { %v390_v38 = vmul.f32 %v866_v26, %v346_v30  ;;  %v391_v39 = vmul.f32 %v868_v27, %v347_v31  ;;  %v386_v40 = vmul.f32 %v866_v26, %v342_v32  ;;  %v387_v41 = vmul.f32 %v868_v27, %v343_v33  ;;  %v234_v30 = vld [vmem:[%s849_s11 + $0xa0] sm:$0xff]  ;;  %v235_v31 = vld [vmem:[%s849_s11 + $0xa8] sm:$0xff] }
  0xbb   : > { %v280_v42 = vpop.permute.xlu1 %279  ;;  %v270_v43 = vpop.permute.xlu0 %269 }
  0xbc   : > { %422 = vst [vmem:[%s880_s20 + $0x20] sm:$0xff] %v390_v38  ;;  %423 = vst [vmem:[%s880_s20 + $0x28] sm:$0xff] %v391_v39  ;;  %v348_v44 = vmul.f32 %v280_v42, %v220_v34  ;;  %v349_v45 = vmul.f32 %v280_v42, %v221_v35  ;;  %v344_v46 = vmul.f32 %v270_v43, %v216_v36  ;;  %v240_v42 = vld [vmem:[%s849_s11 + $0xd0] sm:$0xff] }
  0xbd   : > { %418 = vst [vmem:[%s880_s20] sm:$0xff] %v386_v40  ;;  %419 = vst [vmem:[%s880_s20 + $0x8] sm:$0xff] %v387_v41  ;;  %v345_v47 = vmul.f32 %v270_v43, %v217_v37  ;;  %v241_v43 = vld [vmem:[%s849_s11 + $0xd8] sm:$0xff] }
  0xbe   : > { %v392_v52 = vmul.f32 %v866_v26, %v348_v44  ;;  %v393_v53 = vmul.f32 %v868_v27, %v349_v45  ;;  %v388_v54 = vmul.f32 %v866_v26, %v344_v46  ;;  %v238_v44 = vld [vmem:[%s849_s11 + $0xc0] sm:$0xff]  ;;  %v239_v45 = vld [vmem:[%s849_s11 + $0xc8] sm:$0xff] }
  0xbf   : > { %v389_v55 = vmul.f32 %v868_v27, %v345_v47  ;;  %v290_v56 = vpop.permute.xlu1 %289  ;;  %v285_v57 = vpop.permute.xlu0 %284 }
  0xc0   : > { %424 = vst [vmem:[%s880_s20 + $0x30] sm:$0xff] %v392_v52  ;;  %425 = vst [vmem:[%s880_s20 + $0x38] sm:$0xff] %v393_v53  ;;  %v352_v58 = vmul.f32 %v290_v56, %v224_v48  ;;  %v353_v59 = vmul.f32 %v290_v56, %v225_v49  ;;  %v350_v60 = vmul.f32 %v285_v57, %v222_v50  ;;  %v244_v56 = vld [vmem:[%s849_s11 + $0xf0] sm:$0xff] }
  0xc1   : > { %420 = vst [vmem:[%s880_s20 + $0x10] sm:$0xff] %v388_v54  ;;  %421 = vst [vmem:[%s880_s20 + $0x18] sm:$0xff] %v389_v55  ;;  %v351_v61 = vmul.f32 %v285_v57, %v223_v51  ;;  %v245_v57 = vld [vmem:[%s849_s11 + $0xf8] sm:$0xff] }
  0xc2   : > { %v396_v2 = vmul.f32 %v866_v26, %v352_v58  ;;  %v397_v3 = vmul.f32 %v868_v27, %v353_v59  ;;  %v394_v4 = vmul.f32 %v866_v26, %v350_v60  ;;  %v242_v58 = vld [vmem:[%s849_s11 + $0xe0] sm:$0xff]  ;;  %v243_v59 = vld [vmem:[%s849_s11 + $0xe8] sm:$0xff]  ;;  %s659_s11 = scalar_lea.vmem %s658_s10, 8192 }
  0xc3   : > { %v395_v5 = vmul.f32 %v868_v27, %v351_v61  ;;  %v300_v6 = vpop.permute.xlu1 %299  ;;  %v295_v7 = vpop.permute.xlu0 %294  ;;  %p661_p8 = scmp.lt.s32.totalorder %s659_s11, %s653_s30 }
  0xc4   : > { %428 = vst [vmem:[%s880_s20 + $0x50] sm:$0xff] %v396_v2  ;;  %429 = vst [vmem:[%s880_s20 + $0x58] sm:$0xff] %v397_v3  ;;  %v356_v8 = vmul.f32 %v300_v6, %v228_v62  ;;  %v357_v9 = vmul.f32 %v300_v6, %v229_v63  ;;  %v354_v10 = vmul.f32 %v295_v7, %v226_v0 }
  0xc5   : > { %426 = vst [vmem:[%s880_s20 + $0x40] sm:$0xff] %v394_v4  ;;  %427 = vst [vmem:[%s880_s20 + $0x48] sm:$0xff] %v395_v5  ;;  %v355_v11 = vmul.f32 %v295_v7, %v227_v1  ;;  %p662_p10 = por %p661_p8, %p660_p7 }
  0xc6   : > { %v400_v16 = vmul.f32 %v866_v26, %v356_v8  ;;  %v401_v17 = vmul.f32 %v868_v27, %v357_v9  ;;  %v398_v18 = vmul.f32 %v866_v26, %v354_v10 }
  0xc7   : > { %v399_v19 = vmul.f32 %v868_v27, %v355_v11  ;;  %v310_v20 = vpop.permute.xlu1 %309  ;;  %v305_v21 = vpop.permute.xlu0 %304  ;;  %p663_p0 = pnand %p662_p10, %p656_p5 }
  0xc8   : > { %432 = vst [vmem:[%s880_s20 + $0x70] sm:$0xff] %v400_v16  ;;  %433 = vst [vmem:[%s880_s20 + $0x78] sm:$0xff] %v401_v17  ;;  %v360_v22 = vmul.f32 %v310_v20, %v232_v12  ;;  %v361_v23 = vmul.f32 %v310_v20, %v233_v13  ;;  %v358_v24 = vmul.f32 %v305_v21, %v230_v14 }
  0xc9   : > { %430 = vst [vmem:[%s880_s20 + $0x60] sm:$0xff] %v398_v18  ;;  %431 = vst [vmem:[%s880_s20 + $0x68] sm:$0xff] %v399_v19  ;;  %v359_v25 = vmul.f32 %v305_v21, %v231_v15 }
  0xca   : > { %v404_v32 = vmul.f32 %v866_v26, %v360_v22  ;;  %v405_v33 = vmul.f32 %v868_v27, %v361_v23  ;;  %v402_v34 = vmul.f32 %v866_v26, %v358_v24 }
  0xcb   : > { %v403_v35 = vmul.f32 %v868_v27, %v359_v25  ;;  %v320_v36 = vpop.permute.xlu1 %319  ;;  %v315_v37 = vpop.permute.xlu0 %314 }
  0xcc   : > { %436 = vst [vmem:[%s880_s20 + $0x90] sm:$0xff] %v404_v32  ;;  %437 = vst [vmem:[%s880_s20 + $0x98] sm:$0xff] %v405_v33  ;;  %v364_v38 = vmul.f32 %v320_v36, %v236_v28  ;;  %v365_v39 = vmul.f32 %v320_v36, %v237_v29  ;;  %v362_v40 = vmul.f32 %v315_v37, %v234_v30 }
  0xcd   : > { %434 = vst [vmem:[%s880_s20 + $0x80] sm:$0xff] %v402_v34  ;;  %435 = vst [vmem:[%s880_s20 + $0x88] sm:$0xff] %v403_v35  ;;  %v363_v41 = vmul.f32 %v315_v37, %v235_v31 }
  0xce   : > { %v408_v46 = vmul.f32 %v866_v26, %v364_v38  ;;  %v409_v47 = vmul.f32 %v868_v27, %v365_v39  ;;  %v406_v48 = vmul.f32 %v866_v26, %v362_v40 }
  0xcf   : > { %v407_v49 = vmul.f32 %v868_v27, %v363_v41  ;;  %v330_v50 = vpop.permute.xlu1 %329  ;;  %v325_v51 = vpop.permute.xlu0 %324 }
  0xd0   : > { %440 = vst [vmem:[%s880_s20 + $0xb0] sm:$0xff] %v408_v46  ;;  %441 = vst [vmem:[%s880_s20 + $0xb8] sm:$0xff] %v409_v47  ;;  %v368_v52 = vmul.f32 %v330_v50, %v240_v42  ;;  %v369_v53 = vmul.f32 %v330_v50, %v241_v43  ;;  %v366_v54 = vmul.f32 %v325_v51, %v238_v44 }
  0xd1   : > { %438 = vst [vmem:[%s880_s20 + $0xa0] sm:$0xff] %v406_v48  ;;  %439 = vst [vmem:[%s880_s20 + $0xa8] sm:$0xff] %v407_v49  ;;  %v367_v55 = vmul.f32 %v325_v51, %v239_v45 }
  0xd2   : > { %v412_v60 = vmul.f32 %v866_v26, %v368_v52  ;;  %v413_v61 = vmul.f32 %v868_v27, %v369_v53  ;;  %v410_v62 = vmul.f32 %v866_v26, %v366_v54 }
  0xd3   : > { %v411_v63 = vmul.f32 %v868_v27, %v367_v55  ;;  %v340_v0 = vpop.permute.xlu1 %339  ;;  %v335_v1 = vpop.permute.xlu0 %334 }
  0xd4   : > { %444 = vst [vmem:[%s880_s20 + $0xd0] sm:$0xff] %v412_v60  ;;  %445 = vst [vmem:[%s880_s20 + $0xd8] sm:$0xff] %v413_v61  ;;  %v372_v2 = vmul.f32 %v340_v0, %v244_v56  ;;  %v373_v3 = vmul.f32 %v340_v0, %v245_v57  ;;  %v370_v4 = vmul.f32 %v335_v1, %v242_v58 }
  0xd5   : > { %442 = vst [vmem:[%s880_s20 + $0xc0] sm:$0xff] %v410_v62  ;;  %443 = vst [vmem:[%s880_s20 + $0xc8] sm:$0xff] %v411_v63  ;;  %v371_v5 = vmul.f32 %v335_v1, %v243_v59 }
  0xd6   : > { %v416_v6 = vmul.f32 %v866_v26, %v372_v2  ;;  %v417_v7 = vmul.f32 %v868_v27, %v373_v3  ;;  %v414_v8 = vmul.f32 %v866_v26, %v370_v4 }
  0xd7   : > { %v415_v9 = vmul.f32 %v868_v27, %v371_v5 }
  0xd8   : > { %448 = vst [vmem:[%s880_s20 + $0xf0] sm:$0xff] %v416_v6  ;;  %449 = vst [vmem:[%s880_s20 + $0xf8] sm:$0xff] %v417_v7 }
  0xd9   : > { %446 = vst [vmem:[%s880_s20 + $0xe0] sm:$0xff] %v414_v8  ;;  %447 = vst [vmem:[%s880_s20 + $0xe8] sm:$0xff] %v415_v9 }
  0xda   : > { %666 = shalt.err (!%p663_p0)
}
  0xdb   : > { %s667_s4 = scalar_lea.hbm %s963_s16, 4096  ;;  %s671_s8 = scalar_lea.hbm %s1019_s3, 8192 }
  0xdc   : > { %p668_p2 = scmp.ne.s32.totalorder %s963_s16, %s667_s4  ;;  %p672_p3 = scmp.lt.s32.totalorder %s963_s16, %s1019_s3 }
  0xdd   : > { %p673_p6 = scmp.lt.s32.totalorder %s671_s8, %s667_s4 }
  0xde   : > { %p669_p9 = pnand %p668_p2, %p1028_p13 }
  0xdf   : > { %p674_p11 = por %p673_p6, %p672_p3 }
  0xe0   : > { %p670_p1 = pneg %p669_p9 }
  0xe2   : > { %p675_p12 = pnand %p674_p11, %p670_p1 }
  0xe4   : > { %678 = shalt.err (!%p675_p12)
}
  0xe5   : > { %s724_s19 = smov 256   ;;  %s725_s20 = smov 16  }
  0xe6   : > { %574 = dma.vmem_to_hbm [thread:$0]  (%p1028_p13), %s965_s26, 4096, %s963_s16, %s451_s29, %s724_s19, %s724_s19, %s725_s20  }
  0xe7 PF: > { %s480_s22 = sand.u32 1, %s705_s12   ;;  %p1029_p4 = scmp.ne.s32.totalorder %s1025_s25, 0 }
  0xe8   : > { %p1030_p5 = scmp.ge.s32.totalorder %s717_s15, 2  ;;  %s481_s27 = scalar_lea.sflag [#allocation4], %s480_s22 }
  0xea   : > { %p581_p7 = pnand %p1030_p5, %p1029_p4 }
  0xec   : > { %p582_p8 = pneg %p581_p7 }
  0xee   : > { %700 = dma.done.wait (%p582_p8), %s481_s27, 4096  }
  0xef   : > { %702 = vsyncadd (%p582_p8), %s481_s27, 4294963200  ;;  %p16_p10 = scmp.ge.s32.totalorder %s771_s18, 4   ;;  %s1031_s12 = smov %s709_s13 }
  0xf0   : > { %s1032_s13 = smov %s713_s14  ;;  %s1033_s14 = smov %s783_s21 }
  0xf1   : > { %s1034_s15 = smov %s771_s18  ;;  %18 = sbr.rel (!%p16_p10) target bundleno = 5 (0x5), region = 80 }
  0xf6   :  { %486 = vsyncpa [#allocation3], 1 }
  0xf7   :  { %488 = vsyncpa [#allocation3 + $0x1], 1 }
  0xf8   :  { %489 = vsyncpa [#allocation4], 1 }
  0xf9   :  { %491 = vsyncpa [#allocation4 + $0x1], 1 }

</bundles_post_ra>
